<compile_context>
chip_gen: v7x
topology: tpu7x:2x2x1
jax: 0.10.0
libtpu: 0.0.40
codegen_flags: <defaults>
</compile_context>

<pallas_src>
import math

import jax
import jax.numpy as jnp
from jax.experimental import pallas as pl
from jax.experimental.pallas import tpu as pltpu


def _gfp_kernel(x_ref, w_ref, sin_ref, cos_ref):
    # x_ref: (TB, 1) f32, w_ref: (1, E) f32 (2*pi already folded in).
    # sin_ref / cos_ref: (TB, E) lane-dense full-block stores (no masked partial writes).
    proj = x_ref[...] * w_ref[...]                      # broadcast -> (TB, E)
    sin_ref[...] = jnp.sin(proj).astype(sin_ref.dtype)
    cos_ref[...] = jnp.cos(proj).astype(cos_ref.dtype)


def _gfp_xla(x1, w_row, out_dtype):
    # Plain XLA fusion path for tiny workloads (pure launch-overhead regime for Pallas).
    proj = x1[:, None] * w_row
    return jnp.concatenate([jnp.sin(proj), jnp.cos(proj)], axis=-1).astype(out_dtype)


def gaussian_fourier_projection(x, W, *, out_dtype=jnp.float32, force_pallas=False,
                                row_tile=512, small_workload_elems=1 << 16):
    """Gaussian Fourier projection.

    x: (B,) or (B, 1) float; W: (E,) float.  Returns (B, 2*E) = [sin(x*W*2pi), cos(x*W*2pi)].
    """
    B = x.shape[0]
    E = W.shape[0]
    x1 = x.reshape(B).astype(jnp.float32)
    # Fold the 2*pi factor into W once (W is fixed / non-trainable).
    w_row = (W.astype(jnp.float32) * (2.0 * math.pi)).reshape(1, E)

    # Dispatch-regime gate: at tiny B*2E the Pallas call is pure fixed overhead.
    if not force_pallas and (B * 2 * E) < small_workload_elems:
        return _gfp_xla(x1, w_row, out_dtype)

    # Row tiling: one whole block if B is small, otherwise >=512-row tiles (mem-bound sweet
    # spot), padding B up to a multiple of the tile so every block is full.
    TB = B if B <= row_tile else row_tile
    Bp = pl.cdiv(B, TB) * TB
    x2d = x1.reshape(B, 1)
    if Bp != B:
        x2d = jnp.pad(x2d, ((0, Bp - B), (0, 0)))

    grid = (Bp // TB,)
    sin_out, cos_out = pl.pallas_call(
        _gfp_kernel,
        out_shape=(
            jax.ShapeDtypeStruct((Bp, E), out_dtype),
            jax.ShapeDtypeStruct((Bp, E), out_dtype),
        ),
        grid=grid,
        in_specs=[
            pl.BlockSpec((TB, 1), lambda i: (i, 0)),   # keep x as a thin VMEM block (not SMEM)
            pl.BlockSpec((1, E), lambda i: (0, 0)),    # W reused every step
        ],
        out_specs=(
            pl.BlockSpec((TB, E), lambda i: (i, 0)),
            pl.BlockSpec((TB, E), lambda i: (i, 0)),
        ),
        compiler_params=pltpu.CompilerParams(
            dimension_semantics=("parallel",),         # shard batch across TCs on v7x
        ),
    )(x2d, w_row)

    out = jnp.concatenate([sin_out, cos_out], axis=-1)  # layout plumbing outside the kernel
    if Bp != B:
        out = out[:B]
    return out


def gaussian_fourier_projection_ref(x, W):
    x_proj = x.reshape(-1, 1).astype(jnp.float32) * W[None, :].astype(jnp.float32) * 2.0 * math.pi
    return jnp.concatenate([jnp.sin(x_proj), jnp.cos(x_proj)], axis=-1)


if __name__ == "__main__":
    key = jax.random.PRNGKey(0)
    k_w, k_x, k_x2 = jax.random.split(key, 3)

    # Small test (matches the PyTorch module usage): B=8, embedding_size=32.
    embedding_size = 32
    scale = 1.0
    batch = 8

    W = jax.random.normal(k_w, (embedding_size,), dtype=jnp.float32) * scale
    x = jax.random.uniform(k_x, (batch, 1), dtype=jnp.float32)

    out = gaussian_fourier_projection(x, W, force_pallas=True)  # force the Pallas path
    out = jax.block_until_ready(out)
    ref = gaussian_fourier_projection_ref(x, W)
    assert out.shape == (batch, 2 * embedding_size), out.shape
    assert jnp.allclose(out, ref, atol=2e-5, rtol=2e-5), "mismatch vs reference (small)"

    # Larger gridded test: exercises row tiling (TB=512), padding, and lane-dense stores.
    B2, E2 = 1027, 128
    W2 = jax.random.normal(k_w, (E2,), dtype=jnp.float32) * scale
    x2 = jax.random.uniform(k_x2, (B2, 1), dtype=jnp.float32)
    out2 = jax.block_until_ready(gaussian_fourier_projection(x2, W2, force_pallas=True))
    ref2 = gaussian_fourier_projection_ref(x2, W2)
    assert out2.shape == (B2, 2 * E2), out2.shape
    assert jnp.allclose(out2, ref2, atol=2e-5, rtol=2e-5), "mismatch vs reference (large)"

    print("KERNEL_OK")
</pallas_src>

<mosaic_0001>
module attributes {stable_mosaic.version = 11 : i64} {
  func.func @_gfp_kernel(%arg0: i32, %arg1: memref<8x1xf32, #tpu.memory_space<vmem>>, %arg2: memref<1x32xf32, #tpu.memory_space<vmem>>, %arg3: memref<8x32xf32, #tpu.memory_space<vmem>>, %arg4: memref<8x32xf32, #tpu.memory_space<vmem>>) attributes {dimension_semantics = [#tpu.dimension_semantics<parallel>], iteration_bounds = array<i64: 1>, scalar_prefetch = 0 : i64, scratch_operands = 0 : i64, tpu.core_type = #tpu.core_type<tc>, window_params = [{transform_indices = @transform_0, window_bounds = array<i64: 8, 1>}, {pipeline_mode = #tpu.pipeline_mode<synchronous>, transform_indices = @transform_1, window_bounds = array<i64: 1, 32>}, {transform_indices = @transform_2, window_bounds = array<i64: 8, 32>}, {transform_indices = @transform_3, window_bounds = array<i64: 8, 32>}]} {
    %c0 = arith.constant 0 : index
    %c0_0 = arith.constant 0 : index
    %0 = vector.load %arg1[%c0, %c0_0] : memref<8x1xf32, #tpu.memory_space<vmem>>, vector<8x1xf32>
    %c0_1 = arith.constant 0 : index
    %c0_2 = arith.constant 0 : index
    %1 = vector.load %arg2[%c0_1, %c0_2] : memref<1x32xf32, #tpu.memory_space<vmem>>, vector<1x32xf32>
    %2 = vector.broadcast %0 : vector<8x1xf32> to vector<8x32xf32>
    %3 = vector.broadcast %1 : vector<1x32xf32> to vector<8x32xf32>
    %4 = arith.mulf %2, %3 : vector<8x32xf32>
    %5 = math.sin %4 : vector<8x32xf32>
    %c0_3 = arith.constant 0 : index
    %c0_4 = arith.constant 0 : index
    %6 = vector.load %arg3[%c0_3, %c0_4] : memref<8x32xf32, #tpu.memory_space<vmem>>, vector<8x32xf32>
    tpu.vector_store %arg3[%c0_3, %c0_4], %5 {strides = array<i32>} : memref<8x32xf32, #tpu.memory_space<vmem>>, vector<8x32xf32>,
    %7 = math.cos %4 : vector<8x32xf32>
    %c0_5 = arith.constant 0 : index
    %c0_6 = arith.constant 0 : index
    %8 = vector.load %arg4[%c0_5, %c0_6] : memref<8x32xf32, #tpu.memory_space<vmem>>, vector<8x32xf32>
    tpu.vector_store %arg4[%c0_5, %c0_6], %7 {strides = array<i32>} : memref<8x32xf32, #tpu.memory_space<vmem>>, vector<8x32xf32>,
    return
  }
  func.func @transform_0(%arg0: i32) -> (i32, i32) {
    %c0_i32 = arith.constant 0 : i32
    %c0_i32_0 = arith.constant 0 : i32
    return %arg0, %c0_i32 : i32, i32
  }
  func.func @transform_1(%arg0: i32) -> (i32, i32) {
    %c0_i32 = arith.constant 0 : i32
    %c0_i32_0 = arith.constant 0 : i32
    %c0_i32_1 = arith.constant 0 : i32
    return %c0_i32, %c0_i32_0 : i32, i32
  }
  func.func @transform_2(%arg0: i32) -> (i32, i32) {
    %c0_i32 = arith.constant 0 : i32
    %c0_i32_0 = arith.constant 0 : i32
    return %arg0, %c0_i32 : i32, i32
  }
  func.func @transform_3(%arg0: i32) -> (i32, i32) {
    %c0_i32 = arith.constant 0 : i32
    %c0_i32_0 = arith.constant 0 : i32
    return %arg0, %c0_i32 : i32, i32
  }
}

</mosaic_0001>

<bundles_post_ra>
// kernel: tpu_custom_call.1
= control target key start
LH: loop header
LB: loop body
LE: loop exit
PB: predicated region body
PF: predicated region fallthrough
CT: control target
= control target key end

     0   :  { %9 = vsyncpa [#allocation3], 0  ;;  %v342_v1 = vmov 0   ;;  %s424_s0 = inlined_call_operand.vmem [shape: f32[8,1], index: 0, kind: input, shape index: {}]   ;;  %s425_s1 = inlined_call_operand.vmem [shape: f32[1,32], index: 1, kind: input, shape index: {}]   ;;  %s426_s2 = inlined_call_operand.hbm [shape: f32[8,32], index: 2, kind: output, shape index: {0}]   ;;  %s427_s3 = inlined_call_operand.hbm [shape: f32[8,32], index: 3, kind: output, shape index: {1}]  }
   0x1   :  { %v15_v0 = vld [vmem:[%s424_s0] sm:$0xff]  ;;  %289 = vset.pattern.permute.xlu0 %v342_v1 }
   0x2   :  { %19 = vperm.xlu0 %289, %v15_v0  }
   0x3   :  { %10 = vsyncpa [#allocation5], 0  ;;  %v267_v2 = vld [vmem:[%s425_s1] ss:$0 sm:$0xff]  ;;  %v343_v15 = vmov 683565275  }
   0x4   :  { %v344_v17 = vmov 2475754826   ;;  %v345_v20 = vmov 2131351028   ;;  %v346_v23 = vmov 2102212464  }
   0x5   :  { %v347_v26 = vmov 920167782   ;;  %v348_v29 = vmov 1326507024   ;;  %vm133_vm10 = vcmask 261120   ;;  %s349_s0 = smov [#allocation2]  }
   0x6   :  { %s245_s1 = sshll.u32 %s349_s0, 4  ;;  %s350_s16 = smov [#allocation4]   ;;  %s246_s1 = int_to_ptr.vmem [resolvable:$true] %s245_s1 }
   0x7   :  { %s255_s17 = sshll.u32 %s350_s16, 4  ;;  %s294_s18 = scalar_lea.vmem %s246_s1, 128  ;;  %s256_s17 = int_to_ptr.vmem [resolvable:$true] %s255_s17 }
   0x8   :  { %p295_p0 = scmp.ne.s32.totalorder %s246_s1, %s294_s18  ;;  %p299_p1 = scmp.lt.s32.totalorder %s246_s1, %s246_s1 }
   0x9   :  { %p300_p2 = scmp.lt.s32.totalorder %s294_s18, %s294_s18 }
   0xb   :  { %p301_p3 = por %p300_p2, %p299_p1 }
   0xd   :  { %p302_p4 = pnand %p301_p3, %p295_p0 }
  0x81   :  { %v20_v3 = vpop.permute.xlu0 %19 }
  0x82   :  { %v377_v4 = vmul.f32 %v267_v2, %v20_v3 }
  0x84   :  { %v32_v5 = vand.u32 2139095040, %v377_v4  ;;  %v29_v9 = vand.u32 2147483647, %v377_v4  ;;  %vm31_vm7 = vcmp.lt.s32.totalorder %v377_v4, 0 }
  0x86   :  { %v33_v6 = vshrl.u32 %v32_v5, 23  ;;  %v36_v12 = vand.u32 8388607, %v29_v9  ;;  %vm30_vm8 = vcmp.le.f32.partialorder %v29_v9, 0.7853982 }
  0x88   :  { %v268_v7 = vadd.s32 4294967169, %v33_v6  ;;  %v37_v31 = vor.u32 8388608, %v36_v12 }
  0x8a   :  { %v39_v8 = vadd.s32 1, %v268_v7  ;;  %v77_v45 = vshll.u32 %v37_v31, 8 }
  0x8c   :  { %vm40_vm0 = vcmp.gt.s32.totalorder %v39_v8, 0 }
  0x8d   :  { %v41_v10 = vsel %vm40_vm0, %v39_v8, 0  ;;  %vm121_vm0 = vweird.f32 %v377_v4 }
  0x8e   :  { %v43_v11 = vand.u32 31, %v41_v10  ;;  %v42_v14 = vshrl.u32 %v41_v10, 5 }
  0x90   :  { %v44_v13 = vsub.s32 32, %v43_v11  ;;  %v46_v16 = vshll.u32 %v343_v15, %v43_v11  ;;  %v49_v18 = vshll.u32 %v344_v17, %v43_v11  ;;  %v52_v22 = vshll.u32 %v345_v20, %v43_v11 }
  0x91   :  { %v55_v25 = vshll.u32 %v346_v23, %v43_v11  ;;  %v58_v28 = vshll.u32 %v347_v26, %v43_v11  ;;  %vm61_vm1 = vcmp.lt.s32.totalorder %v42_v14, 1  ;;  %vm64_vm2 = vcmp.lt.s32.totalorder %v42_v14, 4 }
  0x92   :  { %v47_v19 = vshrl.u32 %v344_v17, %v44_v13  ;;  %v50_v21 = vshrl.u32 %v345_v20, %v44_v13  ;;  %v53_v24 = vshrl.u32 %v346_v23, %v44_v13  ;;  %v56_v27 = vshrl.u32 %v347_v26, %v44_v13 }
  0x93   :  { %v59_v30 = vshrl.u32 %v348_v29, %v44_v13  ;;  %v45_v40 = vshrl.u32 %v343_v15, %v44_v13  ;;  %vm63_vm3 = vcmp.lt.s32.totalorder %v42_v14, 3  ;;  %vm62_vm4 = vcmp.lt.s32.totalorder %v42_v14, 2 }
  0x94   :  { %v48_v32 = vor.u32 %v47_v19, %v46_v16  ;;  %v51_v33 = vor.u32 %v50_v21, %v49_v18  ;;  %v54_v34 = vor.u32 %v53_v24, %v52_v22  ;;  %v57_v35 = vor.u32 %v56_v27, %v55_v25 }
  0x95   :  { %v60_v36 = vor.u32 %v59_v30, %v58_v28 }
  0x96   :  { %v66_v37 = vsel %vm64_vm2, %v54_v34, 2102212464  ;;  %v69_v38 = vsel %vm61_vm1, %v48_v32, %v51_v33  ;;  %v73_v39 = vsel %vm61_vm1, %v51_v33, %v54_v34  ;;  %v70_v41 = vsel %vm64_vm2, %v57_v35, 920167782 }
  0x97   :  { %v74_v42 = vsel %vm64_vm2, %v60_v36, 1326507024  ;;  %v71_v43 = vsel %vm63_vm3, %v54_v34, %v70_v41  ;;  %v65_v46 = vsel %vm61_vm1, %v45_v40, %v48_v32  ;;  %v67_v47 = vsel %vm63_vm3, %v51_v33, %v66_v37 }
  0x98   :  { %v75_v44 = vsel %vm63_vm3, %v57_v35, %v74_v42  ;;  %v72_v48 = vsel %vm62_vm4, %v69_v38, %v71_v43  ;;  %v68_v54 = vsel %vm62_vm4, %v65_v46, %v67_v47 }
  0x99   :  { %v76_v49 = vsel %vm62_vm4, %v73_v39, %v75_v44  ;;  %v386_v52 = vmul.u32.u64.low %v77_v45, %v72_v48  ;;  %v387_v53 = vmul.u32.u64.high %v77_v45, %v72_v48, %v386_v52  ;;  %v84_v56 = vmul.u32 %v77_v45, %v68_v54 }
  0x9a   :  { %v383_v50 = vmul.u32.u64.low %v77_v45, %v76_v49  ;;  %v384_v51 = vmul.u32.u64.high %v77_v45, %v76_v49, %v383_v50 }
  0x9b   :  { %v87_v55 = vadd.s32 1, %v387_v53 }
  0x9c   :  { %vm86_vm5 = vc.u32 %v384_v51, %v386_v52  ;;  %v85_v5 = vadd.s32 %v386_v52, %v384_v51 }
  0x9d   :  { %v88_v57 = vsel %vm86_vm5, %v87_v55, %v387_v53 }
  0x9e   :  { %v89_v58 = vadd.s32 %v88_v57, %v84_v56 }
  0xa0   :  { %v90_v59 = vadd.s32 536870912, %v89_v58 }
  0xa2   :  { %v91_v60 = vshrl.u32 %v90_v59, 30 }
  0xa4   :  { %v92_v61 = vshll.u32 %v91_v60, 30  ;;  %v115_v18 = vsub.s32 4, %v91_v60 }
  0xa6   :  { %v93_v62 = vsub.s32 %v89_v58, %v92_v61  ;;  %v116_v21 = vsel %vm31_vm7, %v115_v18, %v91_v60 }
  0xa7   :  { %v118_v23 = vsel %vm30_vm8, 0, %v116_v21 }
  0xa8   :  { %v95_v63 = vsub.s32 0, %v93_v62  ;;  %v122_v24 = vadd.s32 3, %v118_v23  ;;  %v228_v26 = vand.u32 3, %v118_v23 }
  0xaa   :  { %v269_v0 = vmin.u32 %v95_v63, %v93_v62  ;;  %v123_v25 = vand.u32 3, %v122_v24  ;;  %vm233_vm11 = vcmp.eq.s32.totalorder %v228_v26, 2  ;;  %vm230_vm13 = vcmp.eq.s32.totalorder %v228_v26, 0 }
  0xab   :  { %vm229_vm15 = vcmp.lt.s32.totalorder %v228_v26, 2 }
  0xac   :  { %v97_v1 = vclz %v269_v0  ;;  %vm128_vm9 = vcmp.eq.s32.totalorder %v123_v25, 2  ;;  %vm125_vm12 = vcmp.eq.s32.totalorder %v123_v25, 0  ;;  %vm124_vm14 = vcmp.lt.s32.totalorder %v123_v25, 2 }
  0xae   :  { %v270_v2 = vadd.s32 4294967294, %v97_v1 }
  0xb0   :  { %vm271_vm6 = vcmp.lt.s32.totalorder %v270_v2, 0 }
  0xb1   :  { %v100_v3 = vsel %vm271_vm6, 0, %v270_v2 }
  0xb2   :  { %v101_v6 = vsub.s32 32, %v100_v3  ;;  %v105_v7 = vsub.s32 4294967266, %v100_v3  ;;  %v102_v8 = vshll.u32 %v93_v62, %v100_v3 }
  0xb4   :  { %v103_v10 = vshrl.u32 %v85_v5, %v101_v6  ;;  %v106_v11 = vadd.s32 127, %v105_v7 }
  0xb6   :  { %v104_v12 = vor.u32 %v103_v10, %v102_v8  ;;  %v107_v13 = vshll.u32 %v106_v11, 23 }
  0xb8   :  { %v108_v14 = vor.u32 4788187, %v107_v13  ;;  %v111_v16 = vcvt.s32.f32 %v104_v12 }
  0xba   :  { %v109_v15 = vand.u32 2147483647, %v108_v14 }
  0xbc   :  { %v112_v17 = vmul.f32 %v111_v16, %v109_v15 }
  0xbe   :  { %v113_v19 = vxor.u32 2147483648, %v112_v17 }
  0xc0   :  { %v114_v20 = vsel %vm31_vm7, %v113_v19, %v112_v17 }
  0xc1   :  { %v117_v22 = vsel %vm30_vm8, %v377_v4, %v114_v20 }
  0xc2   :  { %290 = vcosq.f32 %v117_v22 }
  0xc3   :  { %292 = vsinq.f32 %v117_v22 }
  0xcc   :  { %v291_v27 = vpop.eup %290 }
  0xcd   :  { %v293_v28 = vpop.eup %292  ;;  %v129_v29 = vxor.u32 2147483648, %v291_v27 }
  0xce   :  { %v126_v30 = vxor.u32 2147483648, %v293_v28 }
  0xcf   :  { %v130_v9 = vsel %vm128_vm9, %v129_v29, %v293_v28  ;;  %v235_v31 = vsel %vm233_vm11, %v129_v29, %v293_v28 }
  0xd0   :  { %v127_v32 = vsel %vm125_vm12, %v291_v27, %v126_v30  ;;  %v232_v33 = vsel %vm230_vm13, %v291_v27, %v126_v30 }
  0xd1   :  { %v131_v34 = vsel %vm124_vm14, %v127_v32, %v130_v9  ;;  %v236_v35 = vsel %vm229_vm15, %v232_v33, %v235_v31 }
  0xd2   :  { %v132_v36 = vsel %vm121_vm0, nan, %v131_v34  ;;  %v237_v37 = vsel %vm121_vm0, nan, %v236_v35 }
  0xd3   :  { %134 = vst.msk [vmem:[#allocation2] sm:$0xff] %vm133_vm10, %v132_v36  ;;  %238 = vst.msk [vmem:[#allocation4] sm:$0xff] %vm133_vm10, %v237_v37 }
  0xd4   :  { %305 = shalt.err (!%p302_p4)
}
  0xd5   :  { %s306_s21 = scalar_lea.hbm %s426_s2, 128 }
  0xd6   :  { %p307_p5 = scmp.ne.s32.totalorder %s426_s2, %s306_s21  ;;  %p310_p6 = scmp.lt.u32.totalorder %s306_s21, %s426_s2 }
  0xd8   :  { %p312_p7 = pnand %p310_p6, %p307_p5 }
  0xda   :  { %315 = shalt.err (!%p312_p7)
}
  0xdb   :  { %248 = dma.vmem_to_hbm [thread:$0]  %s246_s1, 128, %s426_s2, [#allocation3]  }
  0xdc   :  { %s316_s28 = scalar_lea.vmem %s256_s17, 128  ;;  %p321_p9 = scmp.lt.s32.totalorder %s256_s17, %s256_s17 }
  0xdd   :  { %p317_p8 = scmp.ne.s32.totalorder %s256_s17, %s316_s28  ;;  %p322_p10 = scmp.lt.s32.totalorder %s316_s28, %s316_s28 }
  0xdf   :  { %p323_p11 = por %p322_p10, %p321_p9 }
  0xe1   :  { %p324_p12 = pnand %p323_p11, %p317_p8 }
  0xe3   :  { %327 = shalt.err (!%p324_p12)
}
  0xe4   :  { %s328_s4 = scalar_lea.hbm %s427_s3, 128 }
  0xe5   :  { %p329_p13 = scmp.ne.s32.totalorder %s427_s3, %s328_s4  ;;  %p332_p0 = scmp.lt.u32.totalorder %s328_s4, %s427_s3 }
  0xe7   :  { %p334_p1 = pnand %p332_p0, %p329_p13 }
  0xe9   :  { %337 = shalt.err (!%p334_p1)
}
  0xea   :  { %258 = dma.vmem_to_hbm [thread:$0]  %s256_s17, 128, %s427_s3, [#allocation5]  }
  0xeb   :  { %338 = dma.done.wait [#allocation3], 128  }
  0xec   :  { %339 = vsyncadd [#allocation3], 4294967168 }
  0xed   :  { %340 = dma.done.wait [#allocation5], 128  }
  0xee   :  { %341 = vsyncadd [#allocation5], 4294967168 }
  0xef   :  { %265 = vsyncpa [#allocation3], 1 }
  0xf0   :  { %266 = vsyncpa [#allocation5], 1 }

</bundles_post_ra>
